<compile_context>
chip_gen: v6e
topology: v6e:2x2x1
jax: 0.10.0
libtpu: 0.0.40
codegen_flags: <defaults>
</compile_context>

<pallas_src>
import functools

import jax
import jax.numpy as jnp
from jax.experimental import pallas as pl
from jax.experimental.pallas import tpu as pltpu

_MIB = 1024 * 1024


# --------------------------------------------------------------------------
# Sizing helpers (per-generation VMEM budget, block/tile selection)
# --------------------------------------------------------------------------
def _round_up(v, m):
    return (v + m - 1) // m * m


def _sublane_pack(itemsize):
    return {4: 8, 2: 16, 1: 32}.get(itemsize, 8)


def _vmem_capacity_bytes():
    try:
        return int(pltpu.get_tpu_info().vmem_capacity_bytes)
    except Exception:
        return 64 * _MIB  # conservative default (v7x-sized VMEM)


def _max_block_bytes(vmem_cap):
    # v7x (64 MiB VMEM, ~3.2 TB/s HBM): bigger blocks to amortize the ~0.35us
    # per-grid-step cost.  v5e/v6e (128 MiB VMEM, slower HBM): 4 MiB is plenty.
    return 8 * _MIB if vmem_cap <= 80 * _MIB else 4 * _MIB


def _slab_vmem_bytes(nb, C, HW, itemsize):
    """Conservative VMEM working set for one (nb, C, HW) block: double-buffered
    in + out slabs in their tiled VMEM layout, plus in-kernel f32 temporaries."""
    c_io = _round_up(C, _sublane_pack(itemsize))
    c_f32 = _round_up(C, 8)
    hw_pad = _round_up(HW, 128)
    io = nb * c_io * hw_pad * itemsize          # one buffered copy
    tmp = 2 * nb * c_f32 * hw_pad * 4           # xf and xf*xf in f32
    return 4 * io + tmp                         # 2 in bufs + 2 out bufs + temps


def _vmem_limit(working_set, vmem_cap):
    limit = max(32 * _MIB, int(1.5 * working_set))
    return min(limit, int(0.85 * vmem_cap))


def _choose_nb(N, C, HW, itemsize, vmem_cap):
    """Batch elements packed per block for the single-pass kernel.

    Returns 0 when even a single (1, C, HW) slab does not fit the VMEM budget
    (caller falls back to the two-pass kernels)."""
    budget = int(0.7 * vmem_cap)
    if _slab_vmem_bytes(1, C, HW, itemsize) > budget:
        return 0
    max_block = _max_block_bytes(vmem_cap)
    # Keep >= 2 grid steps when possible so v7x (2 TensorCores) can shard the
    # 'parallel' grid axis across cores.
    nb_cap = max(1, (N + 1) // 2) if N >= 2 else 1
    best = 1
    for nb in range(2, nb_cap + 1):
        if _slab_vmem_bytes(nb, C, HW, itemsize) > budget:
            break
        if nb * C * HW * itemsize > max_block:
            break
        best = nb
    # Prefer an exact divisor of N close to the target (no ragged tail block);
    # keep the non-divisor packing when N has no usable divisor (prime/awkward).
    if N % best != 0:
        for d in range(best, 0, -1):
            if N % d == 0 and 2 * d >= best:
                return d
    return best


def _choose_thw(C, HW, itemsize, vmem_cap):
    """Spatial tile width for the two-pass path (multiple of 128, or full HW)."""
    budget = int(0.7 * vmem_cap)
    max_block = _max_block_bytes(vmem_cap)
    thw = max(128, (max_block // max(1, C * itemsize)) // 128 * 128)
    if thw >= HW:
        return HW  # full spatial extent in one tile -> no lane constraint
    while thw > 128 and _slab_vmem_bytes(1, C, thw, itemsize) > budget:
        thw -= 128
    # TODO(synk): for extreme C (where C*128*itemsize alone exceeds the budget)
    #             a channel-tiled variant would be needed; not a GRN regime.
    return thw


# --------------------------------------------------------------------------
# Single-pass kernel: one (NB, C, HW) slab per grid step
# --------------------------------------------------------------------------
def _grn_kernel(params_ref, x_ref, o_ref):
    x = x_ref[...]                                             # (NB, C, HW)
    xf = x.astype(jnp.float32)

    # L2 norm over spatial positions (lane-axis reduction).
    gx = jnp.sqrt(jnp.sum(xf * xf, axis=-1, keepdims=True))    # (NB, C, 1) f32
    # Channel mean per batch element (sublane-axis reduction).
    mean = jnp.mean(gx, axis=1, keepdims=True)                 # (NB, 1, 1) f32
    nx = gx * pl.reciprocal(mean + 1e-6, approx=False)

    gamma = params_ref[0]                                      # f32 scalars (SMEM)
    beta = params_ref[1].astype(x.dtype)

    # Folded epilogue: gamma*(x*nx) + beta + x == x*(gamma*nx + 1) + beta.
    s = (gamma * nx + 1.0).astype(x.dtype)                     # (NB, C, 1)
    o_ref[...] = (x * s + beta).astype(o_ref.dtype)


def _grn_single_pass(params, x_flat, nb, vmem_cap):
    N, C, HW = x_flat.shape
    dtype = x_flat.dtype
    itemsize = jnp.dtype(dtype).itemsize
    num_blocks = pl.cdiv(N, nb)
    vmem_limit = _vmem_limit(_slab_vmem_bytes(nb, C, HW, itemsize), vmem_cap)

    return pl.pallas_call(
        _grn_kernel,
        out_shape=jax.ShapeDtypeStruct((N, C, HW), dtype),
        grid_spec=pltpu.PrefetchScalarGridSpec(
            num_scalar_prefetch=0,
            grid=(num_blocks,),
            in_specs=[
                pl.BlockSpec(memory_space=pltpu.MemorySpace.SMEM),   # params
                pl.BlockSpec((nb, C, HW), lambda i: (i, 0, 0)),      # x
            ],
            out_specs=pl.BlockSpec((nb, C, HW), lambda i: (i, 0, 0)),
        ),
        compiler_params=pltpu.CompilerParams(
            dimension_semantics=("parallel",),
            vmem_limit_bytes=vmem_limit,
        ),
    )(params, x_flat)


# --------------------------------------------------------------------------
# Two-pass kernels: spatial-tiled reduce, then elementwise apply
# --------------------------------------------------------------------------
def _grn_ssq_kernel(hw, thw, x_ref, ssq_ref):
    """Pass 1: accumulate per-(n, c) sum of squares over spatial tiles."""
    j = pl.program_id(1)

    @pl.when(j == 0)
    def _():
        ssq_ref[...] = jnp.zeros_like(ssq_ref)

    xf = x_ref[...].astype(jnp.float32)                        # (1, C, THW)
    if hw % thw != 0:
        # Mask the ragged tail tile (out-of-bounds lanes hold stale data).
        lane = jax.lax.broadcasted_iota(jnp.int32, xf.shape, 2)
        xf = jnp.where(lane < (hw - j * thw), xf, 0.0)
    ssq_ref[...] += jnp.sum(xf * xf, axis=-1, keepdims=True)   # (1, C, 1)


def _grn_apply_kernel(params_ref, scale_ref, x_ref, o_ref):
    """Pass 2: out = x * scale + beta, scale precomputed per (n, c)."""
    x = x_ref[...]                                             # (1, C, THW)
    s = scale_ref[...].astype(x.dtype)                         # (1, C, 1)
    beta = params_ref[1].astype(x.dtype)
    o_ref[...] = (x * s + beta).astype(o_ref.dtype)


def _grn_two_pass(params, x_flat, vmem_cap, force_thw=None):
    N, C, HW = x_flat.shape
    dtype = x_flat.dtype
    itemsize = jnp.dtype(dtype).itemsize
    thw = force_thw if force_thw is not None else _choose_thw(C, HW, itemsize, vmem_cap)
    n_hw = pl.cdiv(HW, thw)
    vmem_limit = _vmem_limit(_slab_vmem_bytes(1, C, thw, itemsize), vmem_cap)

    # Pass 1: per-(n, c) sum of squares (output block resident across the
    # spatial reduction axis).
    ssq = pl.pallas_call(
        functools.partial(_grn_ssq_kernel, HW, thw),
        out_shape=jax.ShapeDtypeStruct((N, C, 1), jnp.float32),
        grid_spec=pltpu.PrefetchScalarGridSpec(
            num_scalar_prefetch=0,
            grid=(N, n_hw),
            in_specs=[pl.BlockSpec((1, C, thw), lambda n, j: (n, 0, j))],
            out_specs=pl.BlockSpec((1, C, 1), lambda n, j: (n, 0, 0)),
        ),
        compiler_params=pltpu.CompilerParams(
            dimension_semantics=("parallel", "arbitrary"),
            vmem_limit_bytes=vmem_limit,
        ),
    )(x_flat)

    # Tiny O(N*C) normalization in plain XLA: scale = gamma*nx + 1.
    gx = jnp.sqrt(ssq)                                         # (N, C, 1) f32
    mean = jnp.mean(gx, axis=1, keepdims=True)                 # (N, 1, 1) f32
    scale = params[0] * (gx / (mean + 1e-6)) + 1.0             # (N, C, 1) f32

    # Pass 2: elementwise apply, tiled the same way.
    return pl.pallas_call(
        _grn_apply_kernel,
        out_shape=jax.ShapeDtypeStruct((N, C, HW), dtype),
        grid_spec=pltpu.PrefetchScalarGridSpec(
            num_scalar_prefetch=0,
            grid=(N, n_hw),
            in_specs=[
                pl.BlockSpec(memory_space=pltpu.MemorySpace.SMEM),   # params
                pl.BlockSpec((1, C, 1), lambda n, j: (n, 0, 0)),     # scale
                pl.BlockSpec((1, C, thw), lambda n, j: (n, 0, j)),   # x
            ],
            out_specs=pl.BlockSpec((1, C, thw), lambda n, j: (n, 0, j)),
        ),
        compiler_params=pltpu.CompilerParams(
            dimension_semantics=("parallel", "parallel"),
            vmem_limit_bytes=vmem_limit,
        ),
    )(params, scale, x_flat)


# --------------------------------------------------------------------------
# Public forward + pure-JAX reference
# --------------------------------------------------------------------------
def grn_forward(x, gamma, beta, *, force_two_pass=False, force_thw=None):
    """GRN forward.  x: (N, C, H, W); gamma, beta: shape (1,) parameters."""
    N, C, H, W = x.shape
    HW = H * W
    itemsize = jnp.dtype(x.dtype).itemsize

    # Free (contiguous) reshape — no pad, no crop.
    x_flat = x.reshape(N, C, HW)
    params = jnp.concatenate(
        [jnp.reshape(gamma, (-1,))[:1], jnp.reshape(beta, (-1,))[:1]]
    ).astype(jnp.float32)                                      # (2,) in SMEM

    vmem_cap = _vmem_capacity_bytes()
    nb = 0 if force_two_pass else _choose_nb(N, C, HW, itemsize, vmem_cap)

    if nb > 0:
        out = _grn_single_pass(params, x_flat, nb, vmem_cap)
    else:
        out = _grn_two_pass(params, x_flat, vmem_cap, force_thw)
    return out.reshape(N, C, H, W)


def grn_reference(x, gamma, beta):
    """Pure-JAX reference mirroring the PyTorch module."""
    gx = jnp.sqrt(jnp.sum(x * x, axis=(2, 3), keepdims=True))
    nx = gx / (jnp.mean(gx, axis=1, keepdims=True) + 1e-6)
    return gamma[0] * (x * nx) + beta[0] + x


if __name__ == "__main__":
    gamma = jnp.full((1,), 0.5, dtype=jnp.float32)
    beta = jnp.full((1,), 0.1, dtype=jnp.float32)

    # Case 1: canonical small shape (HW = 256, lane-dense blocks).
    x1 = jax.random.normal(jax.random.PRNGKey(0), (2, 4, 16, 16), dtype=jnp.float32)
    out1 = jax.block_until_ready(grn_forward(x1, gamma, beta))
    ref1 = grn_reference(x1, gamma, beta)
    assert out1.shape == x1.shape
    assert jnp.allclose(out1, ref1, atol=1e-5, rtol=1e-5), (
        f"case1 max abs err = {jnp.max(jnp.abs(out1 - ref1))}"
    )

    # Case 2: HW = 49 (not a multiple of 128) — no pad / no crop anywhere;
    # the kernel writes the exact shape with masked tail-lane stores.
    x2 = jax.random.normal(jax.random.PRNGKey(1), (2, 12, 7, 7), dtype=jnp.float32)
    out2 = jax.block_until_ready(grn_forward(x2, gamma, beta))
    ref2 = grn_reference(x2, gamma, beta)
    assert out2.shape == x2.shape
    assert jnp.allclose(out2, ref2, atol=1e-5, rtol=1e-5), (
        f"case2 max abs err = {jnp.max(jnp.abs(out2 - ref2))}"
    )

    # Case 3: forced two-pass path (tiled spatial reduce + apply) with a ragged
    # final spatial tile (HW = 195, tile = 128).
    x3 = jax.random.normal(jax.random.PRNGKey(2), (2, 8, 15, 13), dtype=jnp.float32)
    out3 = jax.block_until_ready(
        grn_forward(x3, gamma, beta, force_two_pass=True, force_thw=128))
    ref3 = grn_reference(x3, gamma, beta)
    assert out3.shape == x3.shape
    assert jnp.allclose(out3, ref3, atol=1e-5, rtol=1e-5), (
        f"case3 max abs err = {jnp.max(jnp.abs(out3 - ref3))}"
    )

    # Case 4: bf16 activations (dtype-aware packing; store path stays bf16).
    x4 = jax.random.normal(jax.random.PRNGKey(3), (4, 8, 8, 8), dtype=jnp.bfloat16)
    out4 = jax.block_until_ready(grn_forward(x4, gamma, beta))
    ref4 = grn_reference(x4.astype(jnp.float32), gamma, beta)
    assert out4.shape == x4.shape
    assert jnp.allclose(out4.astype(jnp.float32), ref4, atol=0.1, rtol=0.1), (
        f"case4 max abs err = {jnp.max(jnp.abs(out4.astype(jnp.float32) - ref4))}"
    )

    print("KERNEL_OK")
</pallas_src>

<mosaic_0001>
module attributes {stable_mosaic.version = 11 : i64} {
  func.func @_grn_kernel(%arg0: i32, %arg1: memref<2xf32, #tpu.memory_space<smem>>, %arg2: memref<1x4x256xf32, #tpu.memory_space<vmem>>, %arg3: memref<1x4x256xf32, #tpu.memory_space<vmem>>) attributes {dimension_semantics = [#tpu.dimension_semantics<parallel>], iteration_bounds = array<i64: 2>, scalar_prefetch = 0 : i64, scratch_operands = 0 : i64, tpu.core_type = #tpu.core_type<tc>, window_params = [{transform_indices = @transform_0, window_bounds = array<i64: 2>}, {transform_indices = @transform_1, window_bounds = array<i64: 1, 4, 256>}, {transform_indices = @transform_2, window_bounds = array<i64: 1, 4, 256>}]} {
    %c0 = arith.constant 0 : index
    %c0_0 = arith.constant 0 : index
    %c0_1 = arith.constant 0 : index
    %0 = vector.load %arg2[%c0, %c0_0, %c0_1] : memref<1x4x256xf32, #tpu.memory_space<vmem>>, vector<1x4x256xf32>
    %1 = arith.mulf %0, %0 : vector<1x4x256xf32>
    %cst = arith.constant dense<0.000000e+00> : vector<1x4xf32>
    %2 = vector.multi_reduction <add>, %1, %cst [2] : vector<1x4x256xf32> to vector<1x4xf32>
    %3 = vector.shape_cast %2 : vector<1x4xf32> to vector<1x4x1xf32>
    %4 = math.sqrt %3 : vector<1x4x1xf32>
    %cst_2 = arith.constant dense<0.000000e+00> : vector<1x1xf32>
    %5 = vector.multi_reduction <add>, %4, %cst_2 [1] : vector<1x4x1xf32> to vector<1x1xf32>
    %6 = vector.shape_cast %5 : vector<1x1xf32> to vector<1x1x1xf32>
    %cst_3 = arith.constant 4.000000e+00 : f32
    %7 = vector.broadcast %cst_3 : f32 to vector<1x1x1xf32>
    %8 = arith.divf %6, %7 : vector<1x1x1xf32>
    %cst_4 = arith.constant 9.99999997E-7 : f32
    %9 = vector.broadcast %cst_4 : f32 to vector<1x1x1xf32>
    %10 = arith.addf %8, %9 : vector<1x1x1xf32>
    %11 = tpu.reciprocal %10 : vector<1x1x1xf32> -> vector<1x1x1xf32>
    %12 = vector.broadcast %11 : vector<1x1x1xf32> to vector<1x4x1xf32>
    %13 = arith.mulf %4, %12 : vector<1x4x1xf32>
    %c0_5 = arith.constant 0 : index
    %14 = memref.load %arg1[%c0_5] : memref<2xf32, #tpu.memory_space<smem>>
    %c1 = arith.constant 1 : index
    %15 = memref.load %arg1[%c1] : memref<2xf32, #tpu.memory_space<smem>>
    %16 = vector.broadcast %14 : f32 to vector<1x4x1xf32>
    %17 = arith.mulf %16, %13 : vector<1x4x1xf32>
    %cst_6 = arith.constant 1.000000e+00 : f32
    %18 = vector.broadcast %cst_6 : f32 to vector<1x4x1xf32>
    %19 = arith.addf %17, %18 : vector<1x4x1xf32>
    %20 = vector.broadcast %19 : vector<1x4x1xf32> to vector<1x4x256xf32>
    %21 = arith.mulf %0, %20 : vector<1x4x256xf32>
    %22 = vector.broadcast %15 : f32 to vector<1x4x256xf32>
    %23 = arith.addf %21, %22 : vector<1x4x256xf32>
    %c0_7 = arith.constant 0 : index
    %c0_8 = arith.constant 0 : index
    %c0_9 = arith.constant 0 : index
    %24 = vector.load %arg3[%c0_7, %c0_8, %c0_9] : memref<1x4x256xf32, #tpu.memory_space<vmem>>, vector<1x4x256xf32>
    tpu.vector_store %arg3[%c0_7, %c0_8, %c0_9], %23 {strides = array<i32>} : memref<1x4x256xf32, #tpu.memory_space<vmem>>, vector<1x4x256xf32>,
    return
  }
  func.func @transform_0(%arg0: i32) -> i32 {
    %c0_i32 = arith.constant 0 : i32
    %c0_i32_0 = arith.constant 0 : i32
    return %c0_i32 : i32
  }
  func.func @transform_1(%arg0: i32) -> (i32, i32, i32) {
    %c0_i32 = arith.constant 0 : i32
    %c0_i32_0 = arith.constant 0 : i32
    %c0_i32_1 = arith.constant 0 : i32
    return %arg0, %c0_i32, %c0_i32_0 : i32, i32, i32
  }
  func.func @transform_2(%arg0: i32) -> (i32, i32, i32) {
    %c0_i32 = arith.constant 0 : i32
    %c0_i32_0 = arith.constant 0 : i32
    %c0_i32_1 = arith.constant 0 : i32
    return %arg0, %c0_i32, %c0_i32_0 : i32, i32, i32
  }
}

</mosaic_0001>

<bundles_post_ra>
// kernel: tpu_custom_call.1
= control target key start
LH: loop header
LB: loop body
LE: loop exit
PB: predicated region body
PF: predicated region fallthrough
CT: control target
= control target key end

     0   :  { %7 = vsyncpa [#allocation5], 0  ;;  %s679_s0 = inlined_call_operand.hbm [shape: f32[2], index: 0, kind: input, shape index: {}]   ;;  %s680_s1 = inlined_call_operand.hbm [shape: f32[2,4,256], index: 1, kind: input, shape index: {}]   ;;  %s681_s2 = inlined_call_operand.hbm [shape: f32[2,4,256], index: 2, kind: output, shape index: {}]  }
   0x1   :  { %8 = vsyncpa [#allocation3], 0 }
   0x2   :  { %10 = vsyncpa [#allocation3 + $0x1], 0 }
   0x3   :  { %11 = vsyncpa [#allocation4], 0 }
   0x4   :  { %13 = vsyncpa [#allocation4 + $0x1], 0  ;;  %s526_s9 = smov 0   ;;  %s528_s10 = smov 0  }
   0x5   :  { %s530_s11 = smov 0   ;;  %s532_s12 = smov 0  }
   0x6 LB: > { %s547_s13 = sadd.s32 4294967295, %s505_s12   ;;  %s317_s14 = sadd.s32 4294967294, %s505_s12   ;;  %s505_s12 = sphi %s532_s12, %s701_s12   ;;  %s501_s11 = sphi %s530_s11, %s700_s11   ;;  %s497_s10 = sphi %s528_s10, %s699_s10   ;;  %s493_s9 = sphi %s526_s9, %s698_s9  }
   0x7   : > { %p60_p0 = scmp.ne.s32.totalorder %s497_s10, %s493_s9  ;;  %p682_p1 = scmp.eq.s32.totalorder %s547_s13, 0 }
   0x8   : > { %p84_p2 = scmp.eq.s32.totalorder %s547_s13, 1  ;;  %p90_p3 = scmp.eq.s32.totalorder %s317_s14, 1 }
   0x9   : > { %p556_p4 = por %p682_p1, %p60_p0  ;;  %p318_p5 = scmp.ge.s32.totalorder %s505_s12, 1 }
   0xa   : > { %p561_p6 = por %p90_p3, %p60_p0  ;;  %p97_p7 = scmp.lt.s32.totalorder %s505_s12, 3 }
   0xb   : > { %s686_s15 = scalar_select %p556_p4, 1, 0 }
   0xc   : > { %s687_s16 = scalar_select %p561_p6, 1, 0 }
   0xd   : > { %p566_p8 = pnand %p318_p5, %p97_p7  ;;  %s572_s18 = sadd.s32 1, %s505_s12  }
   0xe   : > { %s44_s19 = ssub.s32 %s505_s12, %s572_s18  ;;  %s47_s20 = sadd.s32 1, %s501_s11 }
   0xf   : > { %s688_s17 = scalar_select %p566_p8, 1, 0 }
  0x10   : > { %p344_p10 = pneg %p566_p8  ;;  %p45_p12 = scmp.eq.s32.totalorder %s44_s19, 0 }
  0x11   : > { %p54_p13 = scmp.ne.s32.totalorder %s501_s11, %s497_s10  ;;  %p55_p0 = scmp.eq.s32.totalorder %s505_s12, 0 }
  0x12   : > { %p345_p11 = pnand %p344_p10, %p682_p1  ;;  %p357_p3 = scmp.lt.s32.totalorder %s505_s12, 2 }
  0x13   : > { %s507_s21 = smov [#allocation2]   ;;  %p56_p5 = por %p55_p0, %p54_p13 }
  0x14   : > { %347 = dma.hbm_to_smem (!%p345_p11), %s679_s0, 16, %s507_s21, [#allocation5]  }
  0x15   : > { %s589_s24 = scalar_select %p45_p12, %s501_s11, %s47_s20  }
  0x16   : > { %p593_p7 = por %p84_p2, %p54_p13  ;;  %s119_s26 = sand.u32 1, %s501_s11  }
  0x17   : > { %s334_s27 = sshll.u32 %s505_s12, 7  ;;  %s321_s28 = sshll.u32 %s119_s26, 3 }
  0x18   : > { %s689_s25 = scalar_select %p593_p7, 1, 0 }
  0x19   : > { %s602_s3 = scalar_lea.hbm %s680_s1, %s334_s27  ;;  %s123_s4 = scalar_lea.vmem [#allocation6], %s321_s28 }
  0x1a   : > { %s131_s5 = sshll.u32 %s123_s4, 4  ;;  %p604_p10 = pnand %p357_p3, %p56_p5  ;;  %s132_s5 = int_to_ptr.vmem [resolvable:$true] %s131_s5 }
  0x1b   : > { %s120_s7 = scalar_lea.sflag [#allocation3], %s119_s26  ;;  %s409_s8 = scalar_lea.hbm %s602_s3, 128 }
  0x1c   : > { %p410_p2 = scmp.ne.s32.totalorder %s602_s3, %s409_s8  ;;  %p411_p11 = pneg %p604_p10 }
  0x1d   : > { %s414_s20 = scalar_lea.hbm %s680_s1, 256  ;;  %p415_p0 = scmp.lt.s32.totalorder %s602_s3, %s680_s1 }
  0x1e   : > { %p412_p12 = pnand %p411_p11, %p410_p2  ;;  %p416_p3 = scmp.lt.s32.totalorder %s414_s20, %s409_s8 }
  0x20   : > { %p413_p13 = pneg %p412_p12  ;;  %p417_p5 = por %p416_p3, %p415_p0 }
  0x22   : > { %p418_p9 = pnand %p417_p5, %p413_p13 }
  0x24   : > { %421 = shalt.err (!%p418_p9)
}
  0x25   : > { %s422_s23 = scalar_lea.vmem %s132_s5, 128  ;;  %s508_s26 = smov [#allocation6]  }
  0x26   : > { %p423_p1 = scmp.ne.s32.totalorder %s132_s5, %s422_s23  ;;  %s427_s27 = sshll.u32 %s508_s26, 4  ;;  %s428_s27 = int_to_ptr.vmem [resolvable:$false] %s427_s27 }
  0x27   : > { %s429_s28 = scalar_lea.vmem %s428_s27, 256  ;;  %p430_p2 = scmp.lt.s32.totalorder %s132_s5, %s428_s27 }
  0x28   : > { %p425_p6 = pnand %p423_p1, %p411_p11  ;;  %p431_p12 = scmp.lt.s32.totalorder %s429_s28, %s422_s23 }
  0x2a   : > { %p426_p7 = pneg %p425_p6  ;;  %p432_p4 = por %p431_p12, %p430_p2 }
  0x2c   : > { %p433_p8 = pnand %p432_p4, %p426_p7 }
  0x2e   : > { %436 = shalt.err (!%p433_p8)
}
  0x2f   : > { %351 = dma.hbm_to_vmem [thread:$0]  (!%p604_p10), %s602_s3, 128, %s132_s5, %s120_s7  }
  0x30   : > { %p691_p13 = scmp.ne.s32.totalorder %s688_s17, 0 }
  0x31   : > { %p692_p9 = scmp.eq.s32.totalorder (!%p691_p13), %s547_s13, 0 }
  0x32   : > { %140 = sbr.rel (%p691_p13) target bundleno = 282 (0x11a), region = 28 }
  0x37   : > { %480 = dma.done.wait (%p692_p9), [#allocation5], 16   ;;  %p693_p1 = pmov %p692_p9 }
  0x38   : > { %s629_s29 = sand.u32 1, %s497_s10   ;;  %p694_p4 = scmp.ne.s32.totalorder %s686_s15, 0 }
  0x39   : > { %482 = vsyncadd (%p693_p1), [#allocation5], 4294967280  ;;  %s326_s30 = sshll.u32 %s629_s29, 3  ;;  %s147_s4 = scalar_lea.sflag [#allocation3], %s629_s29 }
  0x3a   : > { %s150_s3 = scalar_lea.vmem [#allocation6], %s326_s30 }
  0x3b   : > { %484 = dma.done.wait (%p694_p4), %s147_s4, 128  }
  0x3c   : > { %486 = vsyncadd (%p694_p4), %s147_s4, 4294967168 }
  0x3d   : > { %155 = sfence }
  0x3e   : > { %v172_v0 = vld [vmem:[%s150_s3] sm:$0xff]  ;;  %vm177_vm0 = vcmask 1043456   ;;  %s202_s15 = sld [smem:[#allocation2]]  ;;  %v509_v21 = vmov 839922192   ;;  %v211_v23 = vlaneseq  ;;  %s335_s5 = sshll.u32 %s547_s13, 7 }
  0x3f   : > { %v173_v1 = vmul.f32 %v172_v0, %v172_v0  ;;  %v209_v22 = vunpack.c.l.s4 %v509_v21  ;;  %s328_s17 = sld [smem:[#allocation2 + $0x1]]  ;;  %s171_s6 = scalar_lea.vmem [#allocation7], %s326_s30 }
  0x40   : > { %v212_v25 = vshrl.u32 %v211_v23, 7  ;;  %s235_s7 = sshll.u32 %s171_s6, 4  ;;  %s233_s19 = scalar_lea.hbm %s681_s2, %s335_s5  ;;  %s236_s7 = int_to_ptr.vmem [resolvable:$true] %s235_s7 }
  0x41   : > { %v175_v2 = vcombine.high %v173_v1, %v173_v1  ;;  %v178_v3 = vsel %vm177_vm0, %v173_v1, 0.0  ;;  %v210_v24 = vunpack.c.0.s8 %v209_v22  ;;  %s221_s20 = scalar_lea.sflag [#allocation4], %s629_s29  ;;  %s437_s21 = scalar_lea.vmem %s236_s7, 128 }
  0x42   : > { %p438_p6 = scmp.ne.s32.totalorder %s236_s7, %s437_s21  ;;  %p695_p8 = scmp.ne.s32.totalorder %s689_s25, 0 }
  0x43   : > { %v179_v4 = vsel %vm177_vm0, %v175_v2, 0.0  ;;  %v213_v30 = vsub.s32 %v210_v24, %v212_v25  ;;  %s510_s22 = smov [#allocation7]  }
  0x44   : > { %v180_v5 = vadd.f32 %v179_v4, %v178_v3  ;;  %v204_v27 = vstv %s202_s15  ;;  %p439_p7 = pnand %p438_p6, %p695_p8  ;;  %s441_s23 = sshll.u32 %s510_s22, 4  ;;  %s442_s23 = int_to_ptr.vmem [resolvable:$false] %s441_s23 }
  0x45   : > { %v217_v33 = vstv %s328_s17  ;;  %s443_s13 = scalar_lea.vmem %s442_s23, 256  ;;  %p444_p11 = scmp.lt.s32.totalorder %s236_s7, %s442_s23 }
  0x46   : > { %181 = vadd.xlane.f32.xlu0 %v180_v5  ;;  %p440_p10 = pneg %p439_p7  ;;  %p445_p0 = scmp.lt.s32.totalorder %s443_s13, %s437_s21 }
  0x48   : > { %p446_p3 = por %p445_p0, %p444_p11 }
  0x4a   : > { %p447_p5 = pnand %p446_p3, %p440_p10 }
  0xcf   : > { %v182_v6 = vpop.xlane.xlu0 %181 }
  0xd0   : > { %394 = vrsqrt.f32 %v182_v6  ;;  %vm185_vm1 = vcmp.eq.f32.partialorder %v182_v6, inf  ;;  %v188_v9 = vand.u32 2147483648, %v182_v6  ;;  %vm187_vm2 = vcmp.eq.f32.partialorder %v182_v6, 0.0 }
  0xdd   : > { %v395_v7 = vpop.eup %394 }
  0xde   : > { %v184_v8 = vmul.f32 %v395_v7, %v182_v6 }
  0xe0   : > { %v186_v10 = vsel %vm185_vm1, %v182_v6, %v184_v8 }
  0xe1   : > { %v189_v11 = vsel %vm187_vm2, %v188_v9, %v186_v10 }
  0xe2   : > { %v190_v12 = vsel %vm177_vm0, %v189_v11, 0.0 }
  0xe3   : > { %v191_v13 = vrot.slane %v190_v12, 4 }
  0xe5   : > { %v192_v14 = vadd.f32 %v191_v13, %v190_v12 }
  0xe7   : > { %v193_v15 = vrot.slane %v192_v14, 2 }
  0xe9   : > { %v194_v16 = vadd.f32 %v193_v15, %v192_v14 }
  0xeb   : > { %v195_v17 = vrot.slane %v194_v16, 1 }
  0xed   : > { %v196_v18 = vadd.f32 %v195_v17, %v194_v16 }
  0xef   : > { %v198_v19 = vmul.f32 0.25, %v196_v18 }
  0xf1   : > { %v199_v20 = vadd.f32 1e-06, %v198_v19 }
  0xf3   : > { %396 = vrcp.f32 %v199_v20 }
 0x100   : > { %v397_v26 = vpop.eup %396 }
 0x101   : > { %v201_v28 = vmul.f32 %v397_v26, %v189_v11 }
 0x103   : > { %v205_v29 = vmul.f32 %v204_v27, %v201_v28 }
 0x105   : > { %v206_v31 = vadd.f32 1.0, %v205_v29 }
 0x107   : > { %v214_v32 = vrot.slane %v206_v31, %v213_v30 }
 0x109   : > { %v216_v34 = vmul.f32 %v214_v32, %v172_v0 }
 0x10b   : > { %v218_v35 = vadd.f32 %v217_v33, %v216_v34 }
 0x10d   : > { %219 = vst [vmem:[%s171_s6] sm:$0xff] %v218_v35 }
 0x10e   : > { %450 = shalt.err (!%p447_p5)
}
 0x10f   : > { %s451_s26 = scalar_lea.hbm %s233_s19, 128  ;;  %s455_s29 = scalar_lea.hbm %s681_s2, 256 }
 0x110   : > { %p452_p2 = scmp.ne.s32.totalorder %s233_s19, %s451_s26  ;;  %p456_p9 = scmp.lt.s32.totalorder %s233_s19, %s681_s2 }
 0x111   : > { %p457_p1 = scmp.lt.s32.totalorder %s455_s29, %s451_s26 }
 0x112   : > { %p453_p12 = pnand %p452_p2, %p695_p8 }
 0x113   : > { %p458_p4 = por %p457_p1, %p456_p9 }
 0x114   : > { %p454_p13 = pneg %p453_p12 }
 0x116   : > { %p459_p6 = pnand %p458_p4, %p454_p13 }
 0x118   : > { %462 = shalt.err (!%p459_p6)
}
 0x119   : > { %342 = dma.vmem_to_hbm [thread:$0]  (%p695_p8), %s236_s7, 128, %s233_s19, %s221_s20  }
 0x11a PF: > { %s247_s3 = sand.u32 1, %s493_s9   ;;  %p696_p7 = scmp.ne.s32.totalorder %s687_s16, 0 }
 0x11b   : > { %p697_p10 = scmp.ge.s32.totalorder %s505_s12, 2  ;;  %s248_s15 = scalar_lea.sflag [#allocation4], %s247_s3 }
 0x11d   : > { %p353_p11 = pnand %p697_p10, %p696_p7 }
 0x11f   : > { %p354_p0 = pneg %p353_p11 }
 0x121   : > { %488 = dma.done.wait (%p354_p0), %s248_s15, 128  }
 0x122   : > { %490 = vsyncadd (%p354_p0), %s248_s15, 4294967168  ;;  %p16_p3 = scmp.ge.s32.totalorder %s572_s18, 4   ;;  %s698_s9 = smov %s497_s10 }
 0x123   : > { %s699_s10 = smov %s501_s11  ;;  %s700_s11 = smov %s589_s24 }
 0x124   : > { %s701_s12 = smov %s572_s18  ;;  %18 = sbr.rel (!%p16_p3) target bundleno = 6 (0x6), region = 78 }
 0x129   :  { %253 = vsyncpa [#allocation3], 1 }
 0x12a   :  { %255 = vsyncpa [#allocation3 + $0x1], 1 }
 0x12b   :  { %256 = vsyncpa [#allocation4], 1 }
 0x12c   :  { %258 = vsyncpa [#allocation4 + $0x1], 1 }
 0x12d   :  { %259 = vsyncpa [#allocation5], 1 }
 0x12e   :  { %261 = vsyncpa [#allocation5 + $0x1], 1 }

</bundles_post_ra>
